<compile_context>
chip_gen: v6e
topology: v6e:2x2x1
jax: 0.10.0
libtpu: 0.0.40
codegen_flags: <defaults>
</compile_context>

<pallas_src>
import functools

import jax
import jax.numpy as jnp
from jax.experimental import pallas as pl
from jax.experimental.pallas import tpu as pltpu


# ----------------------------- bilinear upsample (align_corners=True, NCHW) ----------------

def _interp_coords(out_size, in_size):
    if out_size == 1:
        return jnp.zeros((1,), jnp.float32)
    return jnp.arange(out_size, dtype=jnp.float32) * ((in_size - 1) / (out_size - 1))


def bilinear_align_corners_nchw(x, out_h, out_w):
    """x: (N, C, H, W) float32 -> (N, C, out_h, out_w)."""
    N, C, H, W = x.shape
    ys = _interp_coords(out_h, H)
    xs = _interp_coords(out_w, W)
    y0 = jnp.floor(ys).astype(jnp.int32)
    x0 = jnp.floor(xs).astype(jnp.int32)
    y1 = jnp.minimum(y0 + 1, H - 1)
    x1 = jnp.minimum(x0 + 1, W - 1)
    wy = (ys - y0.astype(jnp.float32))[None, None, :, None]   # (1, 1, out_h, 1)
    wx = (xs - x0.astype(jnp.float32))[None, None, None, :]   # (1, 1, 1, out_w)

    r0 = x[:, :, y0]            # (N, C, out_h, W)
    r1 = x[:, :, y1]
    a = r0[:, :, :, x0]         # (N, C, out_h, out_w)
    b = r0[:, :, :, x1]
    c = r1[:, :, :, x0]
    d = r1[:, :, :, x1]
    top = a * (1.0 - wx) + b * wx
    bot = c * (1.0 - wx) + d * wx
    return top * (1.0 - wy) + bot * wy


# ----------------------------- Pallas kernel: fused 1x1-conv chain (channel-major) ---------

def decoder_kernel(z_ref, xl_ref,
                   w2t_ref, b2_ref,
                   w3alt_ref, b3a_ref,
                   w3bt_ref, b3b_ref,
                   o_ref):
    xl = xl_ref[0]              # (Cl, TP)   bf16, channel-major pixel tile
    zt = z_ref[0]               # (Cout, TP) bf16, upsampled xt already projected by W3a_t*s3a

    # conv2: 1x1 conv (BN scale folded into the weight) + bias + ReLU  -> (Cm, TP)
    y2 = jnp.dot(w2t_ref[...], xl, preferred_element_type=jnp.float32)
    y2 = jnp.maximum(y2 + b2_ref[...], 0.0)

    # conv3[0]: concat(xt_up, y2) @ W3a  ==  zt (xt half, precomputed) + W3a_l^T @ y2
    y3 = jnp.dot(w3alt_ref[...], y2.astype(jnp.bfloat16),
                 preferred_element_type=jnp.float32)
    y3 = jnp.maximum(y3 + zt.astype(jnp.float32) + b3a_ref[...], 0.0)

    # conv3[1]: second 1x1 conv + bias + ReLU  -> (Cout, TP)
    y4 = jnp.dot(w3bt_ref[...], y3.astype(jnp.bfloat16),
                 preferred_element_type=jnp.float32)
    y4 = jnp.maximum(y4 + b3b_ref[...], 0.0)

    o_ref[0] = y4.astype(o_ref.dtype)


def _round_up(x, m):
    return (x + m - 1) // m * m


@functools.partial(jax.jit, static_argnames=("tile_p",))
def decoder_forward(xt, xl, raw_params, tile_p=1024):
    """xt: (N, 256, ht, wt) NCHW; xl: (N, 256, h, w) NCHW -> (N, 128, h, w) NCHW (bf16)."""
    (w2, s2, b2, w3a, s3a, b3a, w3b, s3b, b3b) = raw_params
    N, Ct, ht, wt = xt.shape
    _, Cl, h, w = xl.shape
    Cm = w2.shape[1]        # 48
    Cout = w3b.shape[1]     # 128

    # Fold BN scales into the conv weights; transpose for channel-major (Cout,Cin)@(Cin,P) dots.
    w3a_t, w3a_l = w3a[:Ct], w3a[Ct:]
    w2t = (w2 * s2[None, :]).T.astype(jnp.bfloat16)          # (Cm, Cl)
    w3alt = (w3a_l * s3a[None, :]).T.astype(jnp.bfloat16)    # (Cout, Cm)
    w3bt = (w3b * s3b[None, :]).T.astype(jnp.bfloat16)       # (Cout, Cout)
    b2c = b2[:, None].astype(jnp.float32)                    # (Cm, 1)
    b3ac = b3a[:, None].astype(jnp.float32)                  # (Cout, 1)
    b3bc = b3b[:, None].astype(jnp.float32)                  # (Cout, 1)

    # xt path: 1x1 conv and bilinear interp commute, so project at LOW resolution first and
    # upsample the 128-channel bf16 result (8x less intermediate HBM than 256-ch f32).
    z = jnp.einsum('nchw,cd->ndhw', xt.astype(jnp.float32), w3a_t * s3a[None, :])
    z_up = bilinear_align_corners_nchw(z, h, w).astype(jnp.bfloat16)   # (N, Cout, h, w)

    P = h * w
    tp = min(tile_p, _round_up(P, 128))       # lane-aligned pixel tile, capped by image size
    P_pad = _round_up(P, tp)

    xl_cm = xl.astype(jnp.bfloat16).reshape(N, Cl, P)
    z_cm = z_up.reshape(N, Cout, P)
    if P_pad != P:                            # only pads when h*w is not tile-aligned
        xl_cm = jnp.pad(xl_cm, ((0, 0), (0, 0), (0, P_pad - P)))
        z_cm = jnp.pad(z_cm, ((0, 0), (0, 0), (0, P_pad - P)))

    grid = (N, P_pad // tp)

    def _tiled(c):
        return pl.BlockSpec((1, c, tp), lambda n, j: (n, 0, j))

    def _const(a):
        return pl.BlockSpec(a.shape, lambda n, j: (0, 0))

    out = pl.pallas_call(
        decoder_kernel,
        out_shape=jax.ShapeDtypeStruct((N, Cout, P_pad), jnp.bfloat16),
        grid_spec=pltpu.PrefetchScalarGridSpec(
            num_scalar_prefetch=0,
            grid=grid,
            in_specs=[
                _tiled(Cout),               # projected+upsampled xt path
                _tiled(Cl),                 # xl pixels
                _const(w2t), _const(b2c),
                _const(w3alt), _const(b3ac),
                _const(w3bt), _const(b3bc),
            ],
            out_specs=_tiled(Cout),
        ),
        compiler_params=pltpu.CompilerParams(
            dimension_semantics=("parallel", "parallel")),
    )(z_cm, xl_cm, w2t, b2c, w3alt, b3ac, w3bt, b3bc)

    return out[:, :, :P].reshape(N, Cout, h, w)   # already NCHW; no trailing transpose


# ----------------------------- deterministic parameter construction ------------------------

def fold_bn(key, c):
    """Inference-mode BN folded to per-channel (scale, bias), each of shape (c,)."""
    k1, k2, k3, k4 = jax.random.split(key, 4)
    gamma = 1.0 + 0.1 * jax.random.normal(k1, (c,), jnp.float32)
    beta = 0.1 * jax.random.normal(k2, (c,), jnp.float32)
    mean = 0.1 * jax.random.normal(k3, (c,), jnp.float32)
    var = jnp.abs(jax.random.normal(k4, (c,), jnp.float32)) + 0.5
    eps = 1e-5
    scale = gamma / jnp.sqrt(var + eps)
    bias = beta - mean * scale
    return scale, bias


def make_params(key, c_xt=256, c_xl=256, c_mid=48, c_out=128):
    ks = jax.random.split(key, 6)
    # 1x1 conv weights stored as (C_in, C_out) so the conv is a plain matmul.
    w2 = 0.05 * jax.random.normal(ks[0], (c_xl, c_mid), jnp.float32)
    w3a = 0.05 * jax.random.normal(ks[1], (c_xt + c_mid, c_out), jnp.float32)
    w3b = 0.05 * jax.random.normal(ks[2], (c_out, c_out), jnp.float32)
    s2, b2 = fold_bn(ks[3], c_mid)
    s3a, b3a = fold_bn(ks[4], c_out)
    s3b, b3b = fold_bn(ks[5], c_out)
    return (w2, s2, b2, w3a, s3a, b3a, w3b, s3b, b3b)


# ----------------------------- pure-JAX f32 reference (module semantics) -------------------

def reference_forward(xt, xl, raw_params):
    (w2, s2, b2, w3a, s3a, b3a, w3b, s3b, b3b) = raw_params
    N, Ct, _, _ = xt.shape
    _, Cl, h, w = xl.shape
    xt_up = bilinear_align_corners_nchw(xt.astype(jnp.float32), h, w)   # (N, 256, h, w)
    xt_f = jnp.transpose(xt_up, (0, 2, 3, 1)).reshape(-1, Ct)
    xl_f = jnp.transpose(xl.astype(jnp.float32), (0, 2, 3, 1)).reshape(-1, Cl)
    y2 = jnp.maximum((xl_f @ w2) * s2 + b2, 0.0)
    cat = jnp.concatenate([xt_f, y2], axis=1)
    y3 = jnp.maximum((cat @ w3a) * s3a + b3a, 0.0)
    y4 = jnp.maximum((y3 @ w3b) * s3b + b3b, 0.0)
    return jnp.transpose(y4.reshape(N, h, w, -1), (0, 3, 1, 2))


# ----------------------------- main ---------------------------------------------------------

if __name__ == "__main__":
    key = jax.random.PRNGKey(0)
    k_xt, k_xl, k_p = jax.random.split(key, 3)

    # Small shapes consistent with the module: xt has 256 channels (the 304-wide concat
    # requires it), xl has inplane2=256 channels; xt is at lower spatial resolution than xl.
    N = 2
    xt = jax.random.normal(k_xt, (N, 256, 8, 8), jnp.float32)    # NCHW
    xl = jax.random.normal(k_xl, (N, 256, 16, 16), jnp.float32)  # NCHW

    params = make_params(k_p)

    out = jax.block_until_ready(decoder_forward(xt, xl, params))
    ref = jax.block_until_ready(reference_forward(xt, xl, params))

    assert out.shape == (N, 128, 16, 16), out.shape
    out_f32 = out.astype(jnp.float32)
    assert jnp.allclose(out_f32, ref, rtol=5e-2, atol=5e-2), \
        float(jnp.max(jnp.abs(out_f32 - ref)))

    print("KERNEL_OK")
</pallas_src>

<mosaic_0001>
module attributes {stable_mosaic.version = 11 : i64} {
  func.func @decoder_kernel(%arg0: i32, %arg1: i32, %arg2: memref<1x128x256xbf16, #tpu.memory_space<vmem>>, %arg3: memref<1x256x256xbf16, #tpu.memory_space<vmem>>, %arg4: memref<48x256xbf16, #tpu.memory_space<vmem>>, %arg5: memref<48x1xf32, #tpu.memory_space<vmem>>, %arg6: memref<128x48xbf16, #tpu.memory_space<vmem>>, %arg7: memref<128x1xf32, #tpu.memory_space<vmem>>, %arg8: memref<128x128xbf16, #tpu.memory_space<vmem>>, %arg9: memref<128x1xf32, #tpu.memory_space<vmem>>, %arg10: memref<1x128x256xbf16, #tpu.memory_space<vmem>>) attributes {dimension_semantics = [#tpu.dimension_semantics<parallel>, #tpu.dimension_semantics<parallel>], iteration_bounds = array<i64: 2, 1>, scalar_prefetch = 0 : i64, scratch_operands = 0 : i64, tpu.core_type = #tpu.core_type<tc>, window_params = [{transform_indices = @transform_0, window_bounds = array<i64: 1, 128, 256>}, {transform_indices = @transform_1, window_bounds = array<i64: 1, 256, 256>}, {pipeline_mode = #tpu.pipeline_mode<synchronous>, transform_indices = @transform_2, window_bounds = array<i64: 48, 256>}, {pipeline_mode = #tpu.pipeline_mode<synchronous>, transform_indices = @transform_3, window_bounds = array<i64: 48, 1>}, {pipeline_mode = #tpu.pipeline_mode<synchronous>, transform_indices = @transform_4, window_bounds = array<i64: 128, 48>}, {pipeline_mode = #tpu.pipeline_mode<synchronous>, transform_indices = @transform_5, window_bounds = array<i64: 128, 1>}, {pipeline_mode = #tpu.pipeline_mode<synchronous>, transform_indices = @transform_6, window_bounds = array<i64: 128, 128>}, {pipeline_mode = #tpu.pipeline_mode<synchronous>, transform_indices = @transform_7, window_bounds = array<i64: 128, 1>}, {transform_indices = @transform_8, window_bounds = array<i64: 1, 128, 256>}]} {
    %c0 = arith.constant 0 : index
    %c0_0 = arith.constant 0 : index
    %c0_1 = arith.constant 0 : index
    %0 = vector.load %arg3[%c0, %c0_0, %c0_1] : memref<1x256x256xbf16, #tpu.memory_space<vmem>>, vector<1x256x256xbf16>
    %1 = vector.shape_cast %0 : vector<1x256x256xbf16> to vector<256x256xbf16>
    %c0_2 = arith.constant 0 : index
    %c0_3 = arith.constant 0 : index
    %c0_4 = arith.constant 0 : index
    %2 = vector.load %arg2[%c0_2, %c0_3, %c0_4] : memref<1x128x256xbf16, #tpu.memory_space<vmem>>, vector<1x128x256xbf16>
    %3 = vector.shape_cast %2 : vector<1x128x256xbf16> to vector<128x256xbf16>
    %c0_5 = arith.constant 0 : index
    %c0_6 = arith.constant 0 : index
    %4 = vector.load %arg4[%c0_5, %c0_6] : memref<48x256xbf16, #tpu.memory_space<vmem>>, vector<48x256xbf16>
    %cst = arith.constant dense<0.000000e+00> : vector<48x256xf32>
    %5 = tpu.matmul %4, %1, %cst {dimension_numbers = #tpu.dot_dimension_numbers<[1], [0], [0], [1], [0, 0, 1, 1], [], []>} : vector<48x256xbf16>, vector<256x256xbf16>, vector<48x256xf32> -> vector<48x256xf32>
    %c0_7 = arith.constant 0 : index
    %c0_8 = arith.constant 0 : index
    %6 = vector.load %arg5[%c0_7, %c0_8] : memref<48x1xf32, #tpu.memory_space<vmem>>, vector<48x1xf32>
    %7 = vector.broadcast %6 : vector<48x1xf32> to vector<48x256xf32>
    %8 = arith.addf %5, %7 : vector<48x256xf32>
    %cst_9 = arith.constant 0.000000e+00 : f32
    %9 = vector.broadcast %cst_9 : f32 to vector<48x256xf32>
    %10 = arith.maximumf %8, %9 : vector<48x256xf32>
    %c0_10 = arith.constant 0 : index
    %c0_11 = arith.constant 0 : index
    %11 = vector.load %arg6[%c0_10, %c0_11] : memref<128x48xbf16, #tpu.memory_space<vmem>>, vector<128x48xbf16>
    %12 = arith.truncf %10 : vector<48x256xf32> to vector<48x256xbf16>
    %cst_12 = arith.constant dense<0.000000e+00> : vector<128x256xf32>
    %13 = tpu.matmul %11, %12, %cst_12 {dimension_numbers = #tpu.dot_dimension_numbers<[1], [0], [0], [1], [0, 0, 1, 1], [], []>} : vector<128x48xbf16>, vector<48x256xbf16>, vector<128x256xf32> -> vector<128x256xf32>
    %14 = arith.extf %3 : vector<128x256xbf16> to vector<128x256xf32>
    %15 = arith.addf %13, %14 : vector<128x256xf32>
    %c0_13 = arith.constant 0 : index
    %c0_14 = arith.constant 0 : index
    %16 = vector.load %arg7[%c0_13, %c0_14] : memref<128x1xf32, #tpu.memory_space<vmem>>, vector<128x1xf32>
    %17 = vector.broadcast %16 : vector<128x1xf32> to vector<128x256xf32>
    %18 = arith.addf %15, %17 : vector<128x256xf32>
    %cst_15 = arith.constant 0.000000e+00 : f32
    %19 = vector.broadcast %cst_15 : f32 to vector<128x256xf32>
    %20 = arith.maximumf %18, %19 : vector<128x256xf32>
    %c0_16 = arith.constant 0 : index
    %c0_17 = arith.constant 0 : index
    %21 = vector.load %arg8[%c0_16, %c0_17] : memref<128x128xbf16, #tpu.memory_space<vmem>>, vector<128x128xbf16>
    %22 = arith.truncf %20 : vector<128x256xf32> to vector<128x256xbf16>
    %cst_18 = arith.constant dense<0.000000e+00> : vector<128x256xf32>
    %23 = tpu.matmul %21, %22, %cst_18 {dimension_numbers = #tpu.dot_dimension_numbers<[1], [0], [0], [1], [0, 0, 1, 1], [], []>} : vector<128x128xbf16>, vector<128x256xbf16>, vector<128x256xf32> -> vector<128x256xf32>
    %c0_19 = arith.constant 0 : index
    %c0_20 = arith.constant 0 : index
    %24 = vector.load %arg9[%c0_19, %c0_20] : memref<128x1xf32, #tpu.memory_space<vmem>>, vector<128x1xf32>
    %25 = vector.broadcast %24 : vector<128x1xf32> to vector<128x256xf32>
    %26 = arith.addf %23, %25 : vector<128x256xf32>
    %cst_21 = arith.constant 0.000000e+00 : f32
    %27 = vector.broadcast %cst_21 : f32 to vector<128x256xf32>
    %28 = arith.maximumf %26, %27 : vector<128x256xf32>
    %29 = arith.truncf %28 : vector<128x256xf32> to vector<128x256xbf16>
    %c0_22 = arith.constant 0 : index
    %c0_23 = arith.constant 0 : index
    %c0_24 = arith.constant 0 : index
    %30 = vector.load %arg10[%c0_22, %c0_23, %c0_24] : memref<1x128x256xbf16, #tpu.memory_space<vmem>>, vector<1x128x256xbf16>
    %31 = vector.shape_cast %30 : vector<1x128x256xbf16> to vector<128x256xbf16>
    %32 = vector.shape_cast %29 : vector<128x256xbf16> to vector<1x128x256xbf16>
    tpu.vector_store %arg10[%c0_22, %c0_23, %c0_24], %32 {strides = array<i32>} : memref<1x128x256xbf16, #tpu.memory_space<vmem>>, vector<1x128x256xbf16>,
    return
  }
  func.func @transform_0(%arg0: i32, %arg1: i32) -> (i32, i32, i32) {
    %c0_i32 = arith.constant 0 : i32
    %c0_i32_0 = arith.constant 0 : i32
    return %arg0, %c0_i32, %arg1 : i32, i32, i32
  }
  func.func @transform_1(%arg0: i32, %arg1: i32) -> (i32, i32, i32) {
    %c0_i32 = arith.constant 0 : i32
    %c0_i32_0 = arith.constant 0 : i32
    return %arg0, %c0_i32, %arg1 : i32, i32, i32
  }
  func.func @transform_2(%arg0: i32, %arg1: i32) -> (i32, i32) {
    %c0_i32 = arith.constant 0 : i32
    %c0_i32_0 = arith.constant 0 : i32
    %c0_i32_1 = arith.constant 0 : i32
    return %c0_i32, %c0_i32_0 : i32, i32
  }
  func.func @transform_3(%arg0: i32, %arg1: i32) -> (i32, i32) {
    %c0_i32 = arith.constant 0 : i32
    %c0_i32_0 = arith.constant 0 : i32
    %c0_i32_1 = arith.constant 0 : i32
    return %c0_i32, %c0_i32_0 : i32, i32
  }
  func.func @transform_4(%arg0: i32, %arg1: i32) -> (i32, i32) {
    %c0_i32 = arith.constant 0 : i32
    %c0_i32_0 = arith.constant 0 : i32
    %c0_i32_1 = arith.constant 0 : i32
    return %c0_i32, %c0_i32_0 : i32, i32
  }
  func.func @transform_5(%arg0: i32, %arg1: i32) -> (i32, i32) {
    %c0_i32 = arith.constant 0 : i32
    %c0_i32_0 = arith.constant 0 : i32
    %c0_i32_1 = arith.constant 0 : i32
    return %c0_i32, %c0_i32_0 : i32, i32
  }
  func.func @transform_6(%arg0: i32, %arg1: i32) -> (i32, i32) {
    %c0_i32 = arith.constant 0 : i32
    %c0_i32_0 = arith.constant 0 : i32
    %c0_i32_1 = arith.constant 0 : i32
    return %c0_i32, %c0_i32_0 : i32, i32
  }
  func.func @transform_7(%arg0: i32, %arg1: i32) -> (i32, i32) {
    %c0_i32 = arith.constant 0 : i32
    %c0_i32_0 = arith.constant 0 : i32
    %c0_i32_1 = arith.constant 0 : i32
    return %c0_i32, %c0_i32_0 : i32, i32
  }
  func.func @transform_8(%arg0: i32, %arg1: i32) -> (i32, i32, i32) {
    %c0_i32 = arith.constant 0 : i32
    %c0_i32_0 = arith.constant 0 : i32
    return %arg0, %c0_i32, %arg1 : i32, i32, i32
  }
}

</mosaic_0001>

<bundles_post_ra>
// kernel: decoder_forward.1
= control target key start
LH: loop header
LB: loop body
LE: loop exit
PB: predicated region body
PF: predicated region fallthrough
CT: control target
= control target key end

     0   :  { %s1953_s27 = smov 0   ;;  %s1955_s28 = smov 0   ;;  %s2415_s0 = inlined_call_operand.vmem [shape: bf16[2,128,256], index: 0, kind: input, shape index: {}]   ;;  %s2416_s1 = inlined_call_operand.vmem [shape: bf16[2,256,256], index: 1, kind: input, shape index: {}]   ;;  %s2417_s2 = inlined_call_operand.vmem [shape: bf16[48,256], index: 2, kind: input, shape index: {}]   ;;  %s2418_s3 = inlined_call_operand.vmem [shape: f32[48,1], index: 3, kind: input, shape index: {}]   ;;  %s2419_s4 = inlined_call_operand.vmem [shape: bf16[128,48], index: 4, kind: input, shape index: {}]   ;;  %s2420_s5 = inlined_call_operand.vmem [shape: f32[128,1], index: 5, kind: input, shape index: {}]   ;;  %s2421_s6 = inlined_call_operand.vmem [shape: bf16[128,128], index: 6, kind: input, shape index: {}]   ;;  %s2422_s7 = inlined_call_operand.vmem [shape: f32[128,1], index: 7, kind: input, shape index: {}]   ;;  %s2423_s8 = inlined_call_operand.vmem [shape: bf16[2,128,256], index: 8, kind: output, shape index: {}]  }
   0x1   :  { %s1957_s29 = smov 0  }
   0x2 LB: > { %s30_s30 = sadd.s32 1, %s1901_s28  ;;  %p1671_p0 = scmp.ge.s32.totalorder %s1905_s29, 1  ;;  %s1905_s29 = sphi %s1957_s29, %s18_s29   ;;  %s1901_s28 = sphi %s1955_s28, %s2439_s28   ;;  %s1897_s27 = sphi %s1953_s27, %s2438_s27  }
   0x3   : > { %p32_p1 = scmp.ge.s32.totalorder %s30_s30, 2  ;;  %p300_p2 = scmp.lt.s32.totalorder %s1905_s29, 3 }
   0x5   : > { %s2441_s30 = smov (%p32_p1, %s30_s30), 0  ;;  %p301_p3 = pnand %p1671_p0, %p300_p2 }
   0x7   : > { %304 = sbr.rel (%p301_p3) target bundleno = 848 (0x350), region = 52 }
   0xc   : > { %p352_p4 = scmp.lt.s32.totalorder %s1897_s27, 1  ;;  %v1860_v0 = vld [vmem:[%s2417_s2 + $0x4] ss:$8 sps:$4 sm:$0xff]   ;;  %v2424_v1 = vmov 0   ;;  %v438_v4 = vld [vmem:[%s2418_s3 + $0x10] sm:$0xff]  ;;  %v439_v5 = vld [vmem:[%s2418_s3 + $0x18] sm:$0xff] }
   0xd   : > { %1808 = vset.pattern.permute.xlu0 %v2424_v1  ;;  %1809 = vset.pattern.permute.xlu1 %v2424_v1  ;;  %v440_v2 = vld [vmem:[%s2418_s3 + $0x20] sm:$0xff]  ;;  %v441_v3 = vld [vmem:[%s2418_s3 + $0x28] sm:$0xff]  ;;  %v983_v21 = vld [vmem:[%s2420_s5 + $0x70] sm:$0xff]  ;;  %vm831_vm0 = vcmask 392192  }
   0xe   : > { %s2443_s27 = smov (!%p352_p4, %s1897_s27), 1  ;;  %918 = vmatprep.mubr.bf16.mxu1 %v2424_v1  ;;  %694 = vmatprep.mubr.bf16.mxu0 %v1860_v0  ;;  %v436_v9 = vld [vmem:[%s2418_s3] sm:$0xff]  ;;  %v437_v11 = vld [vmem:[%s2418_s3 + $0x8] sm:$0xff]  ;;  %v984_v22 = vld [vmem:[%s2420_s5 + $0x78] sm:$0xff] }
   0xf   : > { %464 = vperm.xlu0 %1808, %v440_v2   ;;  %s1759_s13 = sshll.u32 %s2443_s27, 8  ;;  %454 = vperm.xlu1 %1809, %v438_v4   ;;  %v981_v24 = vld [vmem:[%s2420_s5 + $0x60] sm:$0xff]  ;;  %v982_v25 = vld [vmem:[%s2420_s5 + $0x68] sm:$0xff]  ;;  %v979_v28 = vld [vmem:[%s2420_s5 + $0x50] sm:$0xff]  ;;  %s1758_s11 = sshll.u32 %s2443_s27, 7 }
  0x10   : > { %s1992_s20 = scalar_lea.vmem %s2416_s1, %s1759_s13  ;;  %v980_v29 = vld [vmem:[%s2420_s5 + $0x58] sm:$0xff]  ;;  %v977_v33 = vld [vmem:[%s2420_s5 + $0x40] sm:$0xff]  ;;  %v978_v34 = vld [vmem:[%s2420_s5 + $0x48] sm:$0xff]  ;;  %s2234_s14 = scalar_lea.vmem %s2415_s0, %s1758_s11 }
  0x11   : > { %v1810_v6 = vld [vmem:[%s1992_s20 + $0x74] ss:$8 sps:$4 sm:$0xff]   ;;  %v1812_v7 = vld [vmem:[%s1992_s20 + $0x70] ss:$8 sps:$4 sm:$0xff]   ;;  %v1813_v8 = vld [vmem:[%s1992_s20 + $0x64] ss:$8 sps:$4 sm:$0xff]   ;;  %s2388_s16 = scalar_lea.vmem %s2423_s8, %s1758_s11 }
  0x12   : > { %662 = vmatprep.subr.bf16.mxu0 %v1810_v6  ;;  %v1815_v10 = vld [vmem:[%s1992_s20 + $0x60] ss:$8 sps:$4 sm:$0xff]   ;;  %v1816_v12 = vld [vmem:[%s1992_s20 + $0x54] ss:$8 sps:$4 sm:$0xff]   ;;  %v1818_v13 = vld [vmem:[%s1992_s20 + $0x50] ss:$8 sps:$4 sm:$0xff]  }
  0x13   : > { %469 = vperm.xlu0 %1808, %v441_v3   ;;  %663 = vmatpush1.bf16.msra.mxu0 %v1812_v7  ;;  %v1819_v14 = vld [vmem:[%s1992_s20 + $0x44] ss:$8 sps:$4 sm:$0xff]   ;;  %v1821_v15 = vld [vmem:[%s1992_s20 + $0x40] ss:$8 sps:$4 sm:$0xff]   ;;  %v1822_v16 = vld [vmem:[%s1992_s20 + $0x34] ss:$8 sps:$4 sm:$0xff]  }
  0x14   : > { %459 = vperm.xlu1 %1809, %v439_v5   ;;  %664 = vmatprep.subr.bf16.mxu0 %v1813_v8  ;;  %v1824_v17 = vld [vmem:[%s1992_s20 + $0x30] ss:$8 sps:$4 sm:$0xff]   ;;  %v1825_v18 = vld [vmem:[%s1992_s20 + $0x24] ss:$8 sps:$4 sm:$0xff]   ;;  %v1827_v19 = vld [vmem:[%s1992_s20 + $0x20] ss:$8 sps:$4 sm:$0xff]  }
  0x15   : > { %v1828_v20 = vld [vmem:[%s1992_s20 + $0x14] ss:$8 sps:$4 sm:$0xff]   ;;  %v1830_v23 = vld [vmem:[%s1992_s20 + $0x10] ss:$8 sps:$4 sm:$0xff]   ;;  %v1831_v26 = vld [vmem:[%s1992_s20 + $0x4] ss:$8 sps:$4 sm:$0xff]  }
  0x16   : > { %v1833_v27 = vld [vmem:[%s1992_s20] ss:$8 sps:$4 sm:$0xff]   ;;  %v1834_v30 = vld [vmem:[%s1992_s20 + $0xf4] ss:$8 sps:$4 sm:$0xff]   ;;  %v1836_v31 = vld [vmem:[%s1992_s20 + $0xf0] ss:$8 sps:$4 sm:$0xff]  }
  0x17   : > { %444 = vperm.xlu0 %1808, %v436_v9   ;;  %665 = vmatpush1.bf16.msra.mxu0 %v1815_v10  ;;  %v1837_v32 = vld [vmem:[%s1992_s20 + $0xe4] ss:$8 sps:$4 sm:$0xff]   ;;  %v1839_v35 = vld [vmem:[%s1992_s20 + $0xe0] ss:$8 sps:$4 sm:$0xff]   ;;  %v975_v36 = vld [vmem:[%s2420_s5 + $0x30] sm:$0xff] }
  0x18   : > { %449 = vperm.xlu1 %1809, %v437_v11   ;;  %666 = vmatprep.subr.bf16.mxu0 %v1816_v12  ;;  %v976_v37 = vld [vmem:[%s2420_s5 + $0x38] sm:$0xff]  ;;  %v973_v40 = vld [vmem:[%s2420_s5 + $0x20] sm:$0xff]  ;;  %v974_v41 = vld [vmem:[%s2420_s5 + $0x28] sm:$0xff] }
  0x19   : > { %v1840_v38 = vld [vmem:[%s1992_s20 + $0xd4] ss:$8 sps:$4 sm:$0xff]   ;;  %v1842_v39 = vld [vmem:[%s1992_s20 + $0xd0] ss:$8 sps:$4 sm:$0xff]   ;;  %v1843_v42 = vld [vmem:[%s1992_s20 + $0xc4] ss:$8 sps:$4 sm:$0xff]  }
  0x1a   : > { %v1845_v43 = vld [vmem:[%s1992_s20 + $0xc0] ss:$8 sps:$4 sm:$0xff]   ;;  %v971_v44 = vld [vmem:[%s2420_s5 + $0x10] sm:$0xff]  ;;  %v972_v45 = vld [vmem:[%s2420_s5 + $0x18] sm:$0xff] }
  0x1b   : > { %667 = vmatpush1.bf16.msra.mxu0 %v1818_v13  ;;  %1057 = vperm.xlu0 %1808, %v983_v21   ;;  %v1846_v46 = vld [vmem:[%s1992_s20 + $0xb4] ss:$8 sps:$4 sm:$0xff]   ;;  %v1848_v47 = vld [vmem:[%s1992_s20 + $0xb0] ss:$8 sps:$4 sm:$0xff]   ;;  %v969_v48 = vld [vmem:[%s2420_s5] sm:$0xff] }
  0x1c   : > { %668 = vmatprep.subr.bf16.mxu0 %v1819_v14  ;;  %1062 = vperm.xlu1 %1809, %v984_v22   ;;  %v970_v49 = vld [vmem:[%s2420_s5 + $0x8] sm:$0xff]  ;;  %v1161_v52 = vld [vmem:[%s2422_s7] sm:$0xff]  ;;  %v1852_v54 = vld [vmem:[%s1992_s20 + $0x94] ss:$8 sps:$4 sm:$0xff]  }
  0x1d   : > { %v1849_v50 = vld [vmem:[%s1992_s20 + $0xa4] ss:$8 sps:$4 sm:$0xff]   ;;  %v1851_v51 = vld [vmem:[%s1992_s20 + $0xa0] ss:$8 sps:$4 sm:$0xff]   ;;  %v1854_v55 = vld [vmem:[%s1992_s20 + $0x90] ss:$8 sps:$4 sm:$0xff]  }
  0x1e   : > { %v1162_v53 = vld [vmem:[%s2422_s7 + $0x8] sm:$0xff]  ;;  %v1163_v56 = vld [vmem:[%s2422_s7 + $0x10] sm:$0xff]  ;;  %v1164_v57 = vld [vmem:[%s2422_s7 + $0x18] sm:$0xff] }
  0x1f   : > { %669 = vmatpush1.bf16.msra.mxu0 %v1821_v15  ;;  %1047 = vperm.xlu0 %1808, %v981_v24   ;;  %v1855_v58 = vld [vmem:[%s1992_s20 + $0x84] ss:$8 sps:$4 sm:$0xff]   ;;  %v1857_v59 = vld [vmem:[%s1992_s20 + $0x80] ss:$8 sps:$4 sm:$0xff]   ;;  %v1861_v63 = vld [vmem:[%s2417_s2 + $0x14] ss:$8 sps:$4 sm:$0xff]  }
  0x20   : > { %670 = vmatprep.subr.bf16.mxu0 %v1822_v16  ;;  %1052 = vperm.xlu1 %1809, %v982_v25   ;;  %v1165_v60 = vld [vmem:[%s2422_s7 + $0x20] sm:$0xff]  ;;  %v1166_v61 = vld [vmem:[%s2422_s7 + $0x28] sm:$0xff]  ;;  %v1167_v0 = vld [vmem:[%s2422_s7 + $0x30] sm:$0xff] }
  0x21   : > { %v1858_v62 = vld [vmem:[%s2417_s2] ss:$8 sps:$4 sm:$0xff]   ;;  %v1168_v2 = vld [vmem:[%s2422_s7 + $0x38] sm:$0xff]  ;;  %v1864_v6 = vld [vmem:[%s2417_s2 + $0x24] ss:$8 sps:$4 sm:$0xff]  }
  0x22   : > { %v1169_v3 = vld [vmem:[%s2422_s7 + $0x40] sm:$0xff]  ;;  %v1170_v4 = vld [vmem:[%s2422_s7 + $0x48] sm:$0xff]  ;;  %v1863_v5 = vld [vmem:[%s2417_s2 + $0x10] ss:$8 sps:$4 sm:$0xff]  }
  0x23   : > { %671 = vmatpush1.bf16.msra.mxu0 %v1824_v17  ;;  %1037 = vperm.xlu0 %1808, %v979_v28   ;;  %v1171_v7 = vld [vmem:[%s2422_s7 + $0x50] sm:$0xff]  ;;  %v1172_v8 = vld [vmem:[%s2422_s7 + $0x58] sm:$0xff]  ;;  %v1173_v9 = vld [vmem:[%s2422_s7 + $0x60] sm:$0xff] }
  0x24   : > { %672 = vmatprep.subr.bf16.mxu0 %v1825_v18  ;;  %1042 = vperm.xlu1 %1809, %v980_v29   ;;  %v1174_v10 = vld [vmem:[%s2422_s7 + $0x68] sm:$0xff]  ;;  %v1175_v12 = vld [vmem:[%s2422_s7 + $0x70] sm:$0xff]  ;;  %v1176_v13 = vld [vmem:[%s2422_s7 + $0x78] sm:$0xff] }
  0x25   : > { %v1866_v11 = vld [vmem:[%s2417_s2 + $0x20] ss:$8 sps:$4 sm:$0xff]  }
  0x27   : > { %673 = vmatpush1.bf16.msra.mxu0 %v1827_v19  ;;  %1027 = vperm.xlu0 %1808, %v977_v33  }
  0x28   : > { %674 = vmatprep.subr.bf16.mxu0 %v1828_v20  ;;  %1032 = vperm.xlu1 %1809, %v978_v34  }
  0x2b   : > { %675 = vmatpush1.bf16.msra.mxu0 %v1830_v23  ;;  %1017 = vperm.xlu0 %1808, %v975_v36  }
  0x2c   : > { %676 = vmatprep.subr.bf16.mxu0 %v1831_v26  ;;  %1022 = vperm.xlu1 %1809, %v976_v37  }
  0x2f   : > { %677 = vmatpush1.bf16.msra.mxu0 %v1833_v27  ;;  %1007 = vperm.xlu0 %1808, %v973_v40  }
  0x30   : > { %678 = vmatprep.subr.bf16.mxu0 %v1834_v30  ;;  %1012 = vperm.xlu1 %1809, %v974_v41  }
  0x33   : > { %679 = vmatpush2.bf16.msra.mxu0 %v1836_v31  ;;  %997 = vperm.xlu0 %1808, %v971_v44  }
  0x34   : > { %680 = vmatprep.subr.bf16.mxu0 %v1837_v32  ;;  %1002 = vperm.xlu1 %1809, %v972_v45  }
  0x37   : > { %681 = vmatpush2.bf16.msra.mxu0 %v1839_v35  ;;  %987 = vperm.xlu0 %1808, %v969_v48  }
  0x38   : > { %682 = vmatprep.subr.bf16.mxu0 %v1840_v38  ;;  %992 = vperm.xlu1 %1809, %v970_v49  }
  0x3b   : > { %683 = vmatpush2.bf16.msra.mxu0 %v1842_v39  ;;  %1179 = vperm.xlu0 %1808, %v1161_v52  }
  0x3c   : > { %684 = vmatprep.subr.bf16.mxu0 %v1843_v42  ;;  %1184 = vperm.xlu1 %1809, %v1162_v53  }
  0x3f   : > { %685 = vmatpush2.bf16.msra.mxu0 %v1845_v43  ;;  %1189 = vperm.xlu0 %1808, %v1163_v56  }
  0x40   : > { %686 = vmatprep.subr.bf16.mxu0 %v1846_v46  ;;  %1194 = vperm.xlu1 %1809, %v1164_v57  }
  0x43   : > { %687 = vmatpush2.bf16.msra.mxu0 %v1848_v47  ;;  %1199 = vperm.xlu0 %1808, %v1165_v60  }
  0x44   : > { %688 = vmatprep.subr.bf16.mxu0 %v1849_v50  ;;  %1204 = vperm.xlu1 %1809, %v1166_v61  }
  0x47   : > { %689 = vmatpush2.bf16.msra.mxu0 %v1851_v51  ;;  %1209 = vperm.xlu0 %1808, %v1167_v0   ;;  %v1869_v0 = vld [vmem:[%s2419_s4 + $0x8] sm:$0xff]  }
  0x48   : > { %690 = vmatprep.subr.bf16.mxu0 %v1852_v54  ;;  %1214 = vperm.xlu1 %1809, %v1168_v2   ;;  %v1870_v2 = vld [vmem:[%s2419_s4 + $0x20] sm:$0xff]  }
  0x4b   : > { %691 = vmatpush2.bf16.msra.mxu0 %v1854_v55  ;;  %1219 = vperm.xlu0 %1808, %v1169_v3   ;;  %v1871_v3 = vld [vmem:[%s2419_s4 + $0x10] sm:$0xff]  }
  0x4c   : > { %692 = vmatprep.subr.bf16.mxu0 %v1855_v58  ;;  %1224 = vperm.xlu1 %1809, %v1170_v4   ;;  %v1872_v4 = vld [vmem:[%s2419_s4 + $0x28] sm:$0xff]  }
  0x4f   : > { %693 = vmatpush2.bf16.msra.mxu0 %v1857_v59  ;;  %1229 = vperm.xlu0 %1808, %v1171_v7  }
  0x50   : > { %1234 = vperm.xlu1 %1809, %v1172_v8  }
  0x52   : > { %695 = vmatmul.mubr.bf16.vlgmr.msra.gmra.mxu0 %v1858_v62  ;;  %v1867_v62 = vld [vmem:[%s2419_s4] sm:$0xff]  }
  0x53   : > { %704 = vmatprep.mubr.bf16.mxu0 %v1861_v63  ;;  %1239 = vperm.xlu0 %1808, %v1173_v9   ;;  %v1868_v63 = vld [vmem:[%s2419_s4 + $0x18] sm:$0xff]  }
  0x54   : > { %1244 = vperm.xlu1 %1809, %v1174_v10  }
  0x57   : > { %1249 = vperm.xlu0 %1808, %v1175_v12  }
  0x58   : > { %1254 = vperm.xlu1 %1809, %v1176_v13  }
  0x5a   : > { %705 = vmatmul.mubr.bf16.gmra.mxu0 %v1863_v5  ;;  %v1873_v5 = vld [vmem:[%s2419_s4 + $0x30] sm:$0xff]  }
  0x5b   : > { %714 = vmatprep.mubr.bf16.mxu0 %v1864_v6  ;;  %v1874_v6 = vld [vmem:[%s2419_s4 + $0x38] sm:$0xff]  }
  0x62   : > { %715 = vmatmul.mubr.bf16.gmra.mxu0 %v1866_v11 }
  0x63   : > { %888 = vmatprep.mubr.bf16.mxu0 %v2424_v1 }
  0x8a   : > { %v455_v20 = vpop.permute.xlu1 %454  ;;  %v465_v22 = vpop.permute.xlu0 %464 }
  0x8e   : > { %v470_v27 = vpop.permute.xlu0 %469 }
  0x8f   : > { %v460_v25 = vpop.permute.xlu1 %459 }
  0x92   : > { %v445_v43 = vpop.permute.xlu0 %444 }
  0x93   : > { %v450_v36 = vpop.permute.xlu1 %449 }
 0x112   : > { %v696_v14 = vpop.f32.mrf.mxu0 }
 0x113   : > { %v697_v54 = vadd.f32 %v696_v14, %v445_v43 }
 0x114   : > { %v698_v15 = vpop.f32.mrf.mxu0 }
 0x115   : > { %v699_v46 = vadd.f32 %v698_v15, %v445_v43  ;;  %v725_v60 = vmax.f32 %v697_v54, 0.0 }
 0x116   : > { %v700_v16 = vpop.f32.mrf.mxu0 }
 0x117   : > { %v701_v49 = vadd.f32 %v700_v16, %v450_v36  ;;  %v726_v56 = vmax.f32 %v699_v46, 0.0 }
 0x118   : > { %v702_v17 = vpop.f32.mrf.mxu0 }
 0x119   : > { %v703_v39 = vadd.f32 %v702_v17, %v450_v36  ;;  %v727_v57 = vmax.f32 %v701_v49, 0.0 }
 0x11a   : > { %v706_v18 = vpop.f32.mrf.mxu0 }
 0x11b   : > { %v707_v44 = vadd.f32 %v706_v18, %v455_v20  ;;  %v728_v52 = vmax.f32 %v703_v39, 0.0  ;;  %v753_v61 = vpack.c.bf16 %v727_v57, %v725_v60  ;;  %v2249_v39 = vld [vmem:[%s2234_s14 + $0x38] sm:$0xff]  ;;  %v423_v57 = vld [vmem:[%s2234_s14 + $0x48] sm:$0xff] }
 0x11c   : > { %v708_v19 = vpop.f32.mrf.mxu0 }
 0x11d   : > { %v709_v34 = vadd.f32 %v708_v19, %v455_v20  ;;  %v729_v55 = vmax.f32 %v707_v44, 0.0  ;;  %v754_v59 = vpack.c.bf16 %v728_v52, %v726_v56  ;;  %v425_v52 = vld [vmem:[%s2234_s14 + $0x58] sm:$0xff] }
 0x11e   : > { %v710_v21 = vpop.f32.mrf.mxu0 }
 0x11f   : > { %v711_v37 = vadd.f32 %v710_v21, %v460_v25  ;;  %v730_v47 = vmax.f32 %v709_v34, 0.0  ;;  %v2214_v21 = vpop.permute.xlu1 %1062  ;;  %v428_v34 = vld [vmem:[%s2234_s14 + $0x70] sm:$0xff] }
 0x120   : > { %v712_v23 = vpop.f32.mrf.mxu0  ;;  %v787_v46 = vunpack.c.l.bf16 %v428_v34 }
 0x121   : > { %v713_v29 = vadd.f32 %v712_v23, %v460_v25  ;;  %v731_v50 = vmax.f32 %v711_v37, 0.0  ;;  %v429_v37 = vld [vmem:[%s2234_s14 + $0x78] sm:$0xff] }
 0x122   : > { %v716_v24 = vpop.f32.mrf.mxu0  ;;  %v789_v54 = vunpack.c.l.bf16 %v429_v37 }
 0x123   : > { %v717_v32 = vadd.f32 %v716_v24, %v465_v22  ;;  %v732_v40 = vmax.f32 %v713_v29, 0.0  ;;  %v755_v58 = vpack.c.bf16 %v731_v50, %v729_v55  ;;  %v2220_v24 = vpop.permute.xlu0 %1057  ;;  %v2261_v50 = vld [vmem:[%s2234_s14 + $0x8] sm:$0xff] }
 0x124   : > { %v718_v26 = vpop.f32.mrf.mxu0 }
 0x125   : > { %v719_v30 = vadd.f32 %v718_v26, %v465_v22  ;;  %v733_v45 = vmax.f32 %v717_v32, 0.0  ;;  %v756_v53 = vpack.c.bf16 %v732_v40, %v730_v47 }
 0x126   : > { %v720_v28 = vpop.f32.mrf.mxu0 }
 0x127   : > { %v721_v31 = vadd.f32 %v720_v28, %v470_v27  ;;  %v734_v41 = vmax.f32 %v719_v30, 0.0  ;;  %v2227_v28 = vpop.permute.xlu1 %1052  ;;  %v2236_v30 = vpop.permute.xlu0 %1047 }
 0x128   : > { %v722_v33 = vpop.f32.mrf.mxu0 }
 0x129   : > { %v723_v35 = vadd.f32 %v722_v33, %v470_v27  ;;  %v735_v38 = vmax.f32 %v721_v31, 0.0  ;;  %v2241_v33 = vld [vmem:[%s2234_s14 + $0x30] sm:$0xff] }
 0x12b   : > { %v736_v42 = vmax.f32 %v723_v35, 0.0  ;;  %v757_v51 = vpack.c.bf16 %v735_v38, %v733_v45  ;;  %v427_v35 = vld [vmem:[%s2234_s14 + $0x68] sm:$0xff]  ;;  %v2246_v38 = vpop.permute.xlu1 %1042  ;;  %v426_v45 = vld [vmem:[%s2234_s14 + $0x60] sm:$0xff]  ;;  %v2267_v55 = vpop.permute.xlu0 %1037 }
 0x12c   : > { %v786_v40 = vunpack.c.h.bf16 %v427_v35 }
 0x12d   : > { %v758_v48 = vpack.c.bf16 %v736_v42, %v734_v41  ;;  %v788_v41 = vunpack.c.h.bf16 %v428_v34  ;;  %v2252_v42 = vld [vmem:[%s2234_s14] sm:$0xff]  ;;  %v783_v34 = vunpack.c.l.bf16 %v426_v45 }
 0x12f   : > { %866 = vmatprep.subr.bf16.mxu0 %v758_v48  ;;  %1777 = vmatprep.subr.bf16.mxu1 %v758_v48 }
 0x130   : > { %867 = vmatpush1.bf16.msra.mxu0 %v757_v51  ;;  %1780 = vmatpush1.bf16.msra.mxu1 %v757_v51  ;;  %v2264_v51 = vld [vmem:[%s2234_s14 + $0x40] sm:$0xff] }
 0x131   : > { %868 = vmatprep.subr.bf16.mxu0 %v756_v53  ;;  %1778 = vmatprep.subr.bf16.mxu1 %v756_v53  ;;  %v784_v53 = vunpack.c.h.bf16 %v426_v45 }
 0x134   : > { %869 = vmatpush1.bf16.msra.mxu0 %v755_v58  ;;  %1781 = vmatpush1.bf16.msra.mxu1 %v755_v58  ;;  %v782_v58 = vunpack.c.h.bf16 %v425_v52 }
 0x135   : > { %870 = vmatprep.subr.bf16.mxu0 %v754_v59  ;;  %1779 = vmatprep.subr.bf16.mxu1 %v754_v59  ;;  %v785_v59 = vunpack.c.l.bf16 %v427_v35  ;;  %v776_v35 = vunpack.c.h.bf16 %v2264_v51 }
 0x138   : > { %871 = vmatpush1.bf16.msra.mxu0 %v753_v61  ;;  %1782 = vmatpush1.bf16.msra.mxu1 %v753_v61  ;;  %v774_v61 = vunpack.c.h.bf16 %v2249_v39 }
 0x13b   : > { %1724 = vmatmul.mubr.msk.bf16.vlgmr.msra.gmra.mxu0 %vm831_vm0, %v1867_v62  ;;  %1727 = vmatmul.mubr.msk.bf16.vlgmr.msra.gmra.mxu1 %vm831_vm0, %v1868_v63  ;;  %v2273_v62 = vld [vmem:[%s2234_s14 + $0x10] sm:$0xff] }
 0x13c   : > { %898 = vmatprep.mubr.bf16.mxu0 %v2424_v1  ;;  %928 = vmatprep.mubr.bf16.mxu1 %v2424_v1 }
 0x143   : > { %1725 = vmatmul.mubr.msk.bf16.gmra.mxu0 %vm831_vm0, %v1869_v0  ;;  %1728 = vmatmul.mubr.msk.bf16.gmra.mxu1 %vm831_vm0, %v1870_v2  ;;  %v790_v2 = vunpack.c.h.bf16 %v429_v37  ;;  %v778_v37 = vunpack.c.h.bf16 %v423_v57 }
 0x144   : > { %908 = vmatprep.mubr.bf16.mxu0 %v2424_v1  ;;  %938 = vmatprep.mubr.bf16.mxu1 %v2424_v1 }
 0x14b   : > { %1726 = vmatmul.mubr.msk.bf16.gmra.mxu0 %vm831_vm0, %v1871_v3  ;;  %1729 = vmatmul.mubr.msk.bf16.gmra.mxu1 %vm831_vm0, %v1872_v4 }
 0x14c   : > { %948 = vmatprep.mubr.bf16.mxu1 %v2424_v1 }
 0x153   : > { %1730 = vmatmul.mubr.msk.bf16.gmra.mxu1 %vm831_vm0, %v1873_v5 }
 0x154   : > { %958 = vmatprep.mubr.bf16.mxu1 %v2424_v1 }
 0x15b   : > { %1731 = vmatmul.mubr.msk.bf16.gmra.mxu1 %vm831_vm0, %v1874_v6  ;;  %v424_v6 = vld [vmem:[%s2234_s14 + $0x50] sm:$0xff] }
 0x15c   : > { %1337 = vmatprep.mubr.bf16.mxu1 %v2424_v1  ;;  %v780_v43 = vunpack.c.h.bf16 %v424_v6 }
 0x1fb   : > { %v2186_v7 = vpop.f32.mrf.mxu1  ;;  %v2190_v9 = vpop.f32.mrf.mxu0 }
 0x1fc   : > { %2426 = vst [vmem:[#allocation2_spill] sm:$0xff] %v2190_v9  ;;  %v2287_v9 = vpop.permute.xlu0 %1027 }
 0x1fd   : > { %v2188_v8 = vpop.f32.mrf.mxu1  ;;  %v2196_v12 = vpop.f32.mrf.mxu0 }
 0x1ff   : > { %v2192_v10 = vpop.f32.mrf.mxu1  ;;  %v2202_v15 = vpop.f32.mrf.mxu0 }
 0x200   : > { %2427 = vst [vmem:[#allocation3_spill] sm:$0xff] %v2202_v15  ;;  %v2290_v15 = vld [vmem:[%s2234_s14 + $0x18] sm:$0xff] }
 0x201   : > { %v2194_v11 = vpop.f32.mrf.mxu1  ;;  %v2208_v18 = vpop.f32.mrf.mxu0 }
 0x203   : > { %v2198_v13 = vpop.f32.mrf.mxu1  ;;  %v2216_v22 = vpop.f32.mrf.mxu0 }
 0x205   : > { %v2200_v14 = vpop.f32.mrf.mxu1  ;;  %v2223_v26 = vpop.f32.mrf.mxu0 }
 0x207   : > { %v2204_v16 = vpop.f32.mrf.mxu1  ;;  %v2238_v31 = vpop.f32.mrf.mxu0 }
 0x209   : > { %v2206_v17 = vpop.f32.mrf.mxu1  ;;  %v2255_v44 = vpop.f32.mrf.mxu0 }
 0x20b   : > { %v2210_v19 = vpop.f32.mrf.mxu1  ;;  %v2277_v5 = vpop.f32.mrf.mxu0 }
 0x20d   : > { %v2212_v20 = vpop.f32.mrf.mxu1 }
 0x20f   : > { %v2218_v23 = vpop.f32.mrf.mxu1 }
 0x211   : > { %v946_v25 = vpop.f32.mrf.mxu1 }
 0x213   : > { %v2225_v27 = vpop.f32.mrf.mxu1 }
 0x215   : > { %v952_v29 = vpop.f32.mrf.mxu1 }
 0x216   : > { %v953_v56 = vadd.f32 %v952_v29, %v784_v53  ;;  %v777_v29 = vunpack.c.l.bf16 %v423_v57  ;;  %v2292_v53 = vpop.f32.mrf.mxu0 }
 0x217   : > { %v954_v32 = vpop.f32.mrf.mxu1 }
 0x219   : > { %v956_v36 = vpop.f32.mrf.mxu1 }
 0x21a   : > { %v957_v63 = vadd.f32 %v956_v36, %v786_v40  ;;  %v2282_v36 = vpop.permute.xlu1 %1032  ;;  %v781_v40 = vunpack.c.l.bf16 %v425_v52  ;;  %v766_v52 = vunpack.c.h.bf16 %v2290_v15 }
 0x21b   : > { %v960_v47 = vpop.f32.mrf.mxu1 }
 0x21c   : > { %v961_v1 = vadd.f32 %v960_v47, %v787_v46  ;;  %v1092_v3 = vadd.f32 %v2227_v28, %v957_v63  ;;  %v945_v63 = vadd.f32 %v2218_v23, %v781_v40  ;;  %v933_v23 = vadd.f32 %v2200_v14, %v776_v35  ;;  %v1018_v40 = vpop.permute.xlu0 %1017 }
 0x21d   : > { %v962_v60 = vpop.f32.mrf.mxu1  ;;  %v2428_v14 = vunpack.c.l.bf16 %v2264_v51  ;;  %v2430_v51 = vunpack.c.l.bf16 %v2249_v39 }
 0x21e   : > { %v963_v0 = vadd.f32 %v962_v60, %v788_v41  ;;  %v947_v41 = vadd.f32 %v946_v25, %v782_v58  ;;  %v955_v60 = vadd.f32 %v954_v32, %v785_v59  ;;  %v951_v25 = vadd.f32 %v2225_v27, %v783_v34 }
 0x21f   : > { %v964_v48 = vpop.f32.mrf.mxu1  ;;  %v1093_v32 = vadd.f32 %v2220_v24, %v961_v1  ;;  %v937_v59 = vadd.f32 %v2206_v17, %v778_v37  ;;  %v931_v35 = vadd.f32 %v2198_v13, %v2428_v14  ;;  %v925_v13 = vadd.f32 %v2192_v10, %v2430_v51 }
 0x220   : > { %v965_v49 = vadd.f32 %v964_v48, %v789_v54  ;;  %v1094_v45 = vadd.f32 %v2220_v24, %v963_v0  ;;  %v779_v48 = vunpack.c.l.bf16 %v424_v6  ;;  %v943_v54 = vadd.f32 %v2212_v20, %v780_v43  ;;  %v1023_v6 = vpop.permute.xlu1 %1022  ;;  %v914_v43 = vpop.f32.mrf.mxu0 }
 0x221   : > { %v966_v4 = vpop.f32.mrf.mxu1  ;;  %v1091_v57 = vadd.f32 %v2227_v28, %v955_v60  ;;  %v1088_v27 = vadd.f32 %v2246_v38, %v947_v41  ;;  %v1125_v17 = vmax.f32 %v1093_v32, 0.0  ;;  %v1087_v41 = vadd.f32 %v2246_v38, %v945_v63 }
 0x222   : > { %v1095_v46 = vadd.f32 %v2214_v21, %v965_v49  ;;  %v967_v47 = vadd.f32 %v966_v4, %v790_v2  ;;  %v1090_v49 = vadd.f32 %v2236_v30, %v953_v56  ;;  %v419_v2 = vld [vmem:[%s2234_s14 + $0x28] sm:$0xff]  ;;  %v1124_v4 = vmax.f32 %v1092_v3, 0.0 }
 0x223   : > { %v1126_v1 = vmax.f32 %v1094_v45, 0.0  ;;  %v941_v20 = vadd.f32 %v2210_v19, %v779_v48  ;;  %v770_v56 = vunpack.c.h.bf16 %v419_v2  ;;  %v1086_v28 = vadd.f32 %v2267_v55, %v943_v54 }
 0x224   : > { %v1096_v58 = vadd.f32 %v2214_v21, %v967_v47  ;;  %v1127_v0 = vmax.f32 %v1095_v46, 0.0  ;;  %v1089_v21 = vadd.f32 %v2236_v30, %v951_v25  ;;  %v1122_v34 = vmax.f32 %v1090_v49, 0.0  ;;  %v418_v47 = vld [vmem:[%s2234_s14 + $0x20] sm:$0xff] }
 0x225   : > { %v935_v3 = vadd.f32 %v2204_v16, %v777_v29  ;;  %v1123_v60 = vmax.f32 %v1091_v57, 0.0  ;;  %v927_v19 = vadd.f32 %v2194_v11, %v774_v61  ;;  %v1084_v46 = vadd.f32 %v2282_v36, %v937_v59  ;;  %v916_v16 = vpop.f32.mrf.mxu0 }
 0x226   : > { %v1128_v24 = vmax.f32 %v1096_v58, 0.0  ;;  %v1159_v45 = vpack.c.bf16 %v1127_v0, %v1125_v17  ;;  %v1120_v30 = vmax.f32 %v1088_v27, 0.0  ;;  %v1158_v48 = vpack.c.bf16 %v1124_v4, %v1122_v34  ;;  %v1013_v58 = vpop.permute.xlu1 %1012 }
 0x227   : > { %v1085_v25 = vadd.f32 %v2267_v55, %v941_v20  ;;  %v768_v32 = vunpack.c.h.bf16 %v418_v47  ;;  %v1121_v29 = vmax.f32 %v1089_v21, 0.0  ;;  %v2429_v38 = vunpack.c.h.bf16 %v2241_v33 }
 0x228   : > { %v1160_v37 = vpack.c.bf16 %v1128_v24, %v1126_v1  ;;  %v1082_v61 = vadd.f32 %v2287_v9, %v933_v23  ;;  %v1118_v54 = vmax.f32 %v1086_v28, 0.0  ;;  %v769_v49 = vunpack.c.l.bf16 %v419_v2  ;;  %v1008_v1 = vpop.permute.xlu0 %1007 }
 0x229   : > { %v923_v11 = vadd.f32 %v2188_v8, %v2429_v38  ;;  %v1083_v55 = vadd.f32 %v2282_v36, %v935_v3  ;;  %v1119_v59 = vmax.f32 %v1087_v41, 0.0  ;;  %v1157_v63 = vpack.c.bf16 %v1123_v60, %v1121_v29 }
 0x22a   : > { %1305 = vmatprep.subr.bf16.mxu1 %v1160_v37  ;;  %v1080_v57 = vadd.f32 %v1023_v6, %v927_v19  ;;  %v1116_v0 = vmax.f32 %v1084_v46, 0.0  ;;  %v917_v27 = vadd.f32 %v916_v16, %v770_v56  ;;  %v1156_v4 = vpack.c.bf16 %v1120_v30, %v1118_v54  ;;  %v1003_v3 = vpop.permute.xlu1 %1002 }
 0x22b   : > { %1306 = vmatpush1.bf16.msra.mxu1 %v1159_v45  ;;  %v2431_v8 = vunpack.c.l.bf16 %v2241_v33  ;;  %v1081_v2 = vadd.f32 %v2287_v9, %v931_v35  ;;  %v767_v20 = vunpack.c.l.bf16 %v418_v47  ;;  %v1117_v21 = vmax.f32 %v1085_v25, 0.0 }
 0x22c   : > { %1307 = vmatprep.subr.bf16.mxu1 %v1158_v48  ;;  %v1078_v39 = vadd.f32 %v1018_v40, %v923_v11  ;;  %v1114_v10 = vmax.f32 %v1082_v61, 0.0  ;;  %v765_v36 = vunpack.c.l.bf16 %v2290_v15  ;;  %v913_v17 = vadd.f32 %v2292_v53, %v768_v32  ;;  %v2435_v61 = vld [vmem:[#allocation3_spill] sm:$0xff] }
 0x22d   : > { %v921_v24 = vadd.f32 %v2186_v7, %v2431_v8  ;;  %v1079_v23 = vadd.f32 %v1023_v6, %v925_v13  ;;  %v1115_v56 = vmax.f32 %v1083_v55, 0.0  ;;  %v915_v28 = vadd.f32 %v914_v43, %v769_v49 }
 0x22e   : > { %v1155_v34 = vpack.c.bf16 %v1119_v59, %v1117_v21  ;;  %v1112_v37 = vmax.f32 %v1080_v57, 0.0  ;;  %v907_v7 = vadd.f32 %v2255_v44, %v766_v52  ;;  %v1076_v9 = vadd.f32 %v1013_v58, %v917_v27  ;;  %v998_v44 = vpop.permute.xlu0 %997 }
 0x22f   : > { %1308 = vmatpush1.bf16.msra.mxu1 %v1157_v63  ;;  %v1154_v33 = vpack.c.bf16 %v1116_v0, %v1114_v10  ;;  %v1077_v41 = vadd.f32 %v1018_v40, %v921_v24  ;;  %v763_v60 = vunpack.c.l.bf16 %v2273_v62  ;;  %v1113_v45 = vmax.f32 %v1081_v2, 0.0 }
 0x230   : > { %1309 = vmatprep.subr.bf16.mxu1 %v1156_v4  ;;  %v911_v19 = vadd.f32 %v2277_v5, %v767_v20  ;;  %v1110_v53 = vmax.f32 %v1078_v39, 0.0  ;;  %v761_v6 = vunpack.c.l.bf16 %v2261_v50  ;;  %v2432_v43 = vunpack.c.h.bf16 %v2273_v62 }
 0x231   : > { %v1074_v15 = vadd.f32 %v1008_v1, %v913_v17  ;;  %v1111_v52 = vmax.f32 %v1079_v23, 0.0  ;;  %v905_v47 = vadd.f32 %v2238_v31, %v765_v36  ;;  %v1153_v40 = vpack.c.bf16 %v1115_v56, %v1113_v45  ;;  %v1875_v56 = vld [vmem:[%s2421_s6] sm:$0xff]  }
 0x232   : > { %v903_v46 = vadd.f32 %v2223_v26, %v2432_v43  ;;  %v1075_v30 = vadd.f32 %v1013_v58, %v915_v28  ;;  %v2433_v48 = vunpack.c.h.bf16 %v2261_v50  ;;  %v1072_v14 = vadd.f32 %v1003_v3, %v907_v7  ;;  %v993_v50 = vpop.permute.xlu1 %992  ;;  %v988_v59 = vpop.permute.xlu0 %987  ;;  %v1878_v7 = vld [vmem:[%s2421_s6 + $0x18] sm:$0xff]  }
 0x233   : > { %1310 = vmatpush1.bf16.msra.mxu1 %v1155_v34  ;;  %v1108_v35 = vmax.f32 %v1076_v9, 0.0  ;;  %v1152_v25 = vpack.c.bf16 %v1112_v37, %v1110_v53  ;;  %v759_v32 = vunpack.c.l.bf16 %v2252_v42  ;;  %v1109_v62 = vmax.f32 %v1077_v41, 0.0  ;;  %v1876_v34 = vld [vmem:[%s2421_s6 + $0x8] sm:$0xff]   ;;  %v1877_v37 = vld [vmem:[%s2421_s6 + $0x10] sm:$0xff]   ;;  %v1879_v9 = vld [vmem:[%s2421_s6 + $0x20] sm:$0xff]  }
 0x234   : > { %1311 = vmatprep.subr.bf16.mxu1 %v1154_v33  ;;  %v897_v5 = vadd.f32 %v2208_v18, %v2433_v48  ;;  %v901_v26 = vadd.f32 %v2216_v22, %v763_v60  ;;  %v1073_v16 = vadd.f32 %v1008_v1, %v911_v19  ;;  %v2434_v29 = vunpack.c.h.bf16 %v2252_v42  ;;  %v2436_v22 = vld [vmem:[#allocation2_spill] sm:$0xff]  ;;  %v1880_v33 = vld [vmem:[%s2421_s6 + $0x28] sm:$0xff]   ;;  %v1882_v41 = vld [vmem:[%s2421_s6 + $0x38] sm:$0xff]  }
 0x235   : > { %v1070_v38 = vadd.f32 %v998_v44, %v903_v46  ;;  %v1106_v11 = vmax.f32 %v1074_v15, 0.0  ;;  %v895_v18 = vadd.f32 %v2435_v61, %v761_v6  ;;  %v1151_v54 = vpack.c.bf16 %v1111_v52, %v1109_v62 }
 0x236   : > { %v893_v31 = vadd.f32 %v2196_v12, %v2434_v29  ;;  %v1071_v49 = vadd.f32 %v1003_v3, %v905_v47  ;;  %v1107_v58 = vmax.f32 %v1075_v30, 0.0  ;;  %v1068_v51 = vadd.f32 %v993_v50, %v897_v5  ;;  %v1881_v3 = vld [vmem:[%s2421_s6 + $0x30] sm:$0xff]   ;;  %v1180_v60 = vpop.permute.xlu0 %1179  ;;  %v1185_v43 = vpop.permute.xlu1 %1184 }
 0x237   : > { %1312 = vmatpush1.bf16.msra.mxu1 %v1153_v40  ;;  %v1104_v13 = vmax.f32 %v1072_v14, 0.0  ;;  %v1150_v55 = vpack.c.bf16 %v1108_v35, %v1106_v11  ;;  %v891_v63 = vadd.f32 %v2436_v22, %v759_v32  ;;  %v1069_v57 = vadd.f32 %v998_v44, %v901_v26 }
 0x238   : > { %1313 = vmatprep.subr.bf16.mxu1 %v1152_v25  ;;  %v1105_v0 = vmax.f32 %v1073_v16, 0.0  ;;  %v1066_v42 = vadd.f32 %v988_v59, %v893_v31  ;;  %v1102_v12 = vmax.f32 %v1070_v38, 0.0  ;;  %v1067_v27 = vadd.f32 %v993_v50, %v895_v18 }
 0x239   : > { %v1103_v4 = vmax.f32 %v1071_v49, 0.0  ;;  %v1100_v8 = vmax.f32 %v1068_v51, 0.0  ;;  %v1065_v2 = vadd.f32 %v988_v59, %v891_v63  ;;  %v1101_v20 = vmax.f32 %v1069_v57, 0.0 }
 0x23a   : > { %v1149_v1 = vpack.c.bf16 %v1107_v58, %v1105_v0  ;;  %v1148_v24 = vpack.c.bf16 %v1104_v13, %v1102_v12  ;;  %v1098_v21 = vmax.f32 %v1066_v42, 0.0  ;;  %v1099_v39 = vmax.f32 %v1067_v27, 0.0  ;;  %v1190_v48 = vpop.permute.xlu0 %1189  ;;  %v1195_v16 = vpop.permute.xlu1 %1194 }
 0x23b   : > { %1314 = vmatpush1.bf16.msra.mxu1 %v1151_v54  ;;  %v1147_v10 = vpack.c.bf16 %v1103_v4, %v1101_v20  ;;  %v1097_v17 = vmax.f32 %v1065_v2, 0.0  ;;  %v2437_v28 = vmov 0  }
 0x23c   : > { %1315 = vmatprep.subr.bf16.mxu1 %v1150_v55  ;;  %v1146_v36 = vpack.c.bf16 %v1100_v8, %v1098_v21 }
 0x23d   : > { %v1145_v23 = vpack.c.bf16 %v1099_v39, %v1097_v17 }
 0x23e   : > { %v1200_v54 = vpop.permute.xlu0 %1199  ;;  %v1205_v63 = vpop.permute.xlu1 %1204 }
 0x23f   : > { %1316 = vmatpush1.bf16.msra.mxu1 %v1149_v1 }
 0x240   : > { %1317 = vmatprep.subr.bf16.mxu1 %v1148_v24 }
 0x242   : > { %v1210_v8 = vpop.permute.xlu0 %1209  ;;  %v1215_v17 = vpop.permute.xlu1 %1214 }
 0x243   : > { %1318 = vmatpush1.bf16.msra.mxu1 %v1147_v10 }
 0x244   : > { %1319 = vmatprep.subr.bf16.mxu1 %v1146_v36 }
 0x247   : > { %1320 = vmatpush1.bf16.msra.mxu1 %v1145_v23 }
 0x24a   : > { %1338 = vmatmul.mubr.bf16.vlgmr.msra.gmra.mxu1 %v1875_v56 }
 0x24b   : > { %1347 = vmatprep.mubr.bf16.mxu1 %v2437_v28 }
 0x252   : > { %1348 = vmatmul.mubr.bf16.gmra.mxu1 %v1876_v34 }
 0x253   : > { %1357 = vmatprep.mubr.bf16.mxu1 %v2437_v28 }
 0x25a   : > { %1358 = vmatmul.mubr.bf16.gmra.mxu1 %v1877_v37 }
 0x25b   : > { %1367 = vmatprep.mubr.bf16.mxu1 %v2437_v28 }
 0x262   : > { %1368 = vmatmul.mubr.bf16.gmra.mxu1 %v1878_v7 }
 0x263   : > { %1377 = vmatprep.mubr.bf16.mxu1 %v2437_v28 }
 0x26a   : > { %1378 = vmatmul.mubr.bf16.gmra.mxu1 %v1879_v9 }
 0x26b   : > { %1387 = vmatprep.mubr.bf16.mxu1 %v2437_v28 }
 0x272   : > { %1388 = vmatmul.mubr.bf16.gmra.mxu1 %v1880_v33  ;;  %v1220_v33 = vpop.permute.xlu0 %1219 }
 0x273   : > { %1397 = vmatprep.mubr.bf16.mxu1 %v2437_v28 }
 0x27a   : > { %1398 = vmatmul.mubr.bf16.gmra.mxu1 %v1881_v3 }
 0x27b   : > { %1407 = vmatprep.mubr.bf16.mxu1 %v2437_v28 }
 0x282   : > { %1408 = vmatmul.mubr.bf16.gmra.mxu1 %v1882_v41 }
 0x30a   : > { %v1339_v45 = vpop.f32.mrf.mxu1 }
 0x30b   : > { %v1340_v19 = vadd.f32 %v1339_v45, %v1180_v60 }
 0x30c   : > { %v1341_v53 = vpop.f32.mrf.mxu1 }
 0x30d   : > { %v1342_v6 = vadd.f32 %v1341_v53, %v1180_v60  ;;  %v1418_v15 = vmax.f32 %v1340_v19, 0.0 }
 0x30e   : > { %v1343_v46 = vpop.f32.mrf.mxu1 }
 0x30f   : > { %v1419_v44 = vmax.f32 %v1342_v6, 0.0  ;;  %v1344_v52 = vadd.f32 %v1343_v46, %v1185_v43 }
 0x310   : > { %v1345_v47 = vpop.f32.mrf.mxu1 }
 0x311   : > { %v1761_v40 = vpack.c.bf16 %v1419_v44, %v1418_v15  ;;  %v1346_v30 = vadd.f32 %v1345_v47, %v1185_v43  ;;  %v1420_v14 = vmax.f32 %v1344_v52, 0.0  ;;  %v1225_v43 = vpop.permute.xlu1 %1224 }
 0x312   : > { %v1349_v5 = vpop.f32.mrf.mxu1 }
 0x313   : > { %1546 = vst [vmem:[%s2388_s16] sm:$0xff] %v1761_v40  ;;  %v1421_v35 = vmax.f32 %v1346_v30, 0.0  ;;  %v1350_v25 = vadd.f32 %v1349_v5, %v1190_v48 }
 0x314   : > { %v1351_v32 = vpop.f32.mrf.mxu1 }
 0x315   : > { %v1762_v62 = vpack.c.bf16 %v1421_v35, %v1420_v14  ;;  %v1352_v26 = vadd.f32 %v1351_v32, %v1190_v48  ;;  %v1422_v31 = vmax.f32 %v1350_v25, 0.0  ;;  %v1230_v48 = vpop.permute.xlu0 %1229 }
 0x316   : > { %v1353_v29 = vpop.f32.mrf.mxu1 }
 0x317   : > { %1547 = vst [vmem:[%s2388_s16 + $0x8] sm:$0xff] %v1762_v62  ;;  %v1423_v38 = vmax.f32 %v1352_v26, 0.0  ;;  %v1354_v11 = vadd.f32 %v1353_v29, %v1195_v16 }
 0x318   : > { %v1355_v50 = vpop.f32.mrf.mxu1 }
 0x319   : > { %v1763_v61 = vpack.c.bf16 %v1423_v38, %v1422_v31  ;;  %v1356_v18 = vadd.f32 %v1355_v50, %v1195_v16  ;;  %v1424_v58 = vmax.f32 %v1354_v11, 0.0  ;;  %v1235_v16 = vpop.permute.xlu1 %1234 }
 0x31a   : > { %v1359_v49 = vpop.f32.mrf.mxu1 }
 0x31b   : > { %1548 = vst [vmem:[%s2388_s16 + $0x10] sm:$0xff] %v1763_v61  ;;  %v1425_v51 = vmax.f32 %v1356_v18, 0.0  ;;  %v1360_v13 = vadd.f32 %v1359_v49, %v1200_v54 }
 0x31c   : > { %v1361_v55 = vpop.f32.mrf.mxu1 }
 0x31d   : > { %v1764_v59 = vpack.c.bf16 %v1425_v51, %v1424_v58  ;;  %v1362_v22 = vadd.f32 %v1361_v55, %v1200_v54  ;;  %v1426_v0 = vmax.f32 %v1360_v13, 0.0  ;;  %v1240_v54 = vpop.permute.xlu0 %1239 }
 0x31e   : > { %v1363_v57 = vpop.f32.mrf.mxu1 }
 0x31f   : > { %1549 = vst [vmem:[%s2388_s16 + $0x18] sm:$0xff] %v1764_v59  ;;  %v1427_v42 = vmax.f32 %v1362_v22, 0.0  ;;  %v1364_v12 = vadd.f32 %v1363_v57, %v1205_v63 }
 0x320   : > { %v1365_v27 = vpop.f32.mrf.mxu1 }
 0x321   : > { %v1765_v4 = vpack.c.bf16 %v1427_v42, %v1426_v0  ;;  %v1366_v1 = vadd.f32 %v1365_v27, %v1205_v63  ;;  %v1428_v2 = vmax.f32 %v1364_v12, 0.0  ;;  %v1245_v63 = vpop.permute.xlu1 %1244 }
 0x322   : > { %v1369_v24 = vpop.f32.mrf.mxu1 }
 0x323   : > { %1550 = vst [vmem:[%s2388_s16 + $0x20] sm:$0xff] %v1765_v4  ;;  %v1429_v20 = vmax.f32 %v1366_v1, 0.0  ;;  %v1370_v21 = vadd.f32 %v1369_v24, %v1210_v8 }
 0x324   : > { %v1371_v39 = vpop.f32.mrf.mxu1 }
 0x325   : > { %v1766_v10 = vpack.c.bf16 %v1429_v20, %v1428_v2  ;;  %v1372_v36 = vadd.f32 %v1371_v39, %v1210_v8  ;;  %v1430_v56 = vmax.f32 %v1370_v21, 0.0  ;;  %v1250_v8 = vpop.permute.xlu0 %1249 }
 0x326   : > { %v1373_v23 = vpop.f32.mrf.mxu1 }
 0x327   : > { %1551 = vst [vmem:[%s2388_s16 + $0x28] sm:$0xff] %v1766_v10  ;;  %v1431_v28 = vmax.f32 %v1372_v36, 0.0  ;;  %v1374_v34 = vadd.f32 %v1373_v23, %v1215_v17 }
 0x328   : > { %v1375_v37 = vpop.f32.mrf.mxu1 }
 0x329   : > { %v1767_v7 = vpack.c.bf16 %v1431_v28, %v1430_v56  ;;  %v1376_v9 = vadd.f32 %v1375_v37, %v1215_v17  ;;  %v1432_v41 = vmax.f32 %v1374_v34, 0.0  ;;  %v1255_v17 = vpop.permute.xlu1 %1254 }
 0x32a   : > { %v1379_v3 = vpop.f32.mrf.mxu1 }
 0x32b   : > { %1552 = vst [vmem:[%s2388_s16 + $0x30] sm:$0xff] %v1767_v7  ;;  %v1433_v60 = vmax.f32 %v1376_v9, 0.0  ;;  %v1380_v45 = vadd.f32 %v1379_v3, %v1220_v33 }
 0x32c   : > { %v1381_v19 = vpop.f32.mrf.mxu1 }
 0x32d   : > { %v1768_v53 = vpack.c.bf16 %v1433_v60, %v1432_v41  ;;  %v1382_v6 = vadd.f32 %v1381_v19, %v1220_v33  ;;  %v1434_v15 = vmax.f32 %v1380_v45, 0.0 }
 0x32e   : > { %v1383_v46 = vpop.f32.mrf.mxu1 }
 0x32f   : > { %1553 = vst [vmem:[%s2388_s16 + $0x38] sm:$0xff] %v1768_v53  ;;  %v1435_v44 = vmax.f32 %v1382_v6, 0.0  ;;  %v1384_v52 = vadd.f32 %v1383_v46, %v1225_v43 }
 0x330   : > { %v1385_v47 = vpop.f32.mrf.mxu1 }
 0x331   : > { %v1769_v40 = vpack.c.bf16 %v1435_v44, %v1434_v15  ;;  %v1386_v30 = vadd.f32 %v1385_v47, %v1225_v43  ;;  %v1436_v14 = vmax.f32 %v1384_v52, 0.0 }
 0x332   : > { %v1389_v5 = vpop.f32.mrf.mxu1 }
 0x333   : > { %1554 = vst [vmem:[%s2388_s16 + $0x40] sm:$0xff] %v1769_v40  ;;  %v1437_v35 = vmax.f32 %v1386_v30, 0.0  ;;  %v1390_v25 = vadd.f32 %v1389_v5, %v1230_v48 }
 0x334   : > { %v1391_v32 = vpop.f32.mrf.mxu1 }
 0x335   : > { %v1770_v62 = vpack.c.bf16 %v1437_v35, %v1436_v14  ;;  %v1392_v26 = vadd.f32 %v1391_v32, %v1230_v48  ;;  %v1438_v31 = vmax.f32 %v1390_v25, 0.0 }
 0x336   : > { %v1393_v29 = vpop.f32.mrf.mxu1 }
 0x337   : > { %1555 = vst [vmem:[%s2388_s16 + $0x48] sm:$0xff] %v1770_v62  ;;  %v1439_v38 = vmax.f32 %v1392_v26, 0.0  ;;  %v1394_v11 = vadd.f32 %v1393_v29, %v1235_v16 }
 0x338   : > { %v1395_v50 = vpop.f32.mrf.mxu1 }
 0x339   : > { %v1771_v61 = vpack.c.bf16 %v1439_v38, %v1438_v31  ;;  %v1396_v18 = vadd.f32 %v1395_v50, %v1235_v16  ;;  %v1440_v58 = vmax.f32 %v1394_v11, 0.0 }
 0x33a   : > { %v1399_v49 = vpop.f32.mrf.mxu1 }
 0x33b   : > { %1556 = vst [vmem:[%s2388_s16 + $0x50] sm:$0xff] %v1771_v61  ;;  %v1441_v51 = vmax.f32 %v1396_v18, 0.0  ;;  %v1400_v13 = vadd.f32 %v1399_v49, %v1240_v54 }
 0x33c   : > { %v1401_v55 = vpop.f32.mrf.mxu1 }
 0x33d   : > { %v1772_v59 = vpack.c.bf16 %v1441_v51, %v1440_v58  ;;  %v1402_v22 = vadd.f32 %v1401_v55, %v1240_v54  ;;  %v1442_v0 = vmax.f32 %v1400_v13, 0.0 }
 0x33e   : > { %v1403_v57 = vpop.f32.mrf.mxu1 }
 0x33f   : > { %1557 = vst [vmem:[%s2388_s16 + $0x58] sm:$0xff] %v1772_v59  ;;  %v1443_v42 = vmax.f32 %v1402_v22, 0.0  ;;  %v1404_v12 = vadd.f32 %v1403_v57, %v1245_v63 }
 0x340   : > { %v1405_v27 = vpop.f32.mrf.mxu1 }
 0x341   : > { %v1773_v4 = vpack.c.bf16 %v1443_v42, %v1442_v0  ;;  %v1406_v1 = vadd.f32 %v1405_v27, %v1245_v63  ;;  %v1444_v2 = vmax.f32 %v1404_v12, 0.0 }
 0x342   : > { %v1409_v24 = vpop.f32.mrf.mxu1 }
 0x343   : > { %1558 = vst [vmem:[%s2388_s16 + $0x60] sm:$0xff] %v1773_v4  ;;  %v1445_v20 = vmax.f32 %v1406_v1, 0.0  ;;  %v1410_v21 = vadd.f32 %v1409_v24, %v1250_v8 }
 0x344   : > { %v1411_v39 = vpop.f32.mrf.mxu1 }
 0x345   : > { %v1774_v10 = vpack.c.bf16 %v1445_v20, %v1444_v2  ;;  %v1412_v36 = vadd.f32 %v1411_v39, %v1250_v8  ;;  %v1446_v56 = vmax.f32 %v1410_v21, 0.0 }
 0x346   : > { %v1413_v23 = vpop.f32.mrf.mxu1 }
 0x347   : > { %1559 = vst [vmem:[%s2388_s16 + $0x68] sm:$0xff] %v1774_v10  ;;  %v1447_v28 = vmax.f32 %v1412_v36, 0.0  ;;  %v1414_v34 = vadd.f32 %v1413_v23, %v1255_v17 }
 0x348   : > { %v1415_v37 = vpop.f32.mrf.mxu1 }
 0x349   : > { %v1775_v7 = vpack.c.bf16 %v1447_v28, %v1446_v56  ;;  %v1416_v9 = vadd.f32 %v1415_v37, %v1255_v17  ;;  %v1448_v33 = vmax.f32 %v1414_v34, 0.0 }
 0x34b   : > { %1560 = vst [vmem:[%s2388_s16 + $0x70] sm:$0xff] %v1775_v7  ;;  %v1449_v3 = vmax.f32 %v1416_v9, 0.0 }
 0x34d   : > { %v1776_v41 = vpack.c.bf16 %v1449_v3, %v1448_v33 }
 0x34f   : > { %1561 = vst [vmem:[%s2388_s16 + $0x78] sm:$0xff] %v1776_v41 }
 0x350 PF: > { %s18_s29 = sadd.s32 1, %s1905_s29   ;;  %s2438_s27 = smov %s1901_s28 }
 0x351   : > { %p15_p5 = scmp.ge.s32.totalorder %s18_s29, 4   ;;  %s2439_s28 = smov %s2441_s30 }
 0x353   :  { %17 = sbr.rel (!%p15_p5) target bundleno = 2 (0x2), region = 85 }

</bundles_post_ra>
